<compile_context>
chip_gen: v7x
topology: tpu7x:2x2x1
jax: 0.10.0
libtpu: 0.0.40
codegen_flags: <defaults>
</compile_context>

<pallas_src>
import functools

import jax
import jax.numpy as jnp
from jax.experimental import pallas as pl
from jax.experimental.pallas import tpu as pltpu


# ----------------------------------------------------------------------------
# phase 1: projection + attention-vector products
# ----------------------------------------------------------------------------
def _project_kernel(x_ref, w_ref, a1_ref, a2_ref, h_ref, f1_ref, f2t_ref):
    x = x_ref[0]                                   # (tm, Fin)  f32
    W = w_ref[...]                                 # (Fin, Fp)  f32
    h = jnp.dot(x, W, preferred_element_type=jnp.float32)          # (tm, Fp)

    a1 = a1_ref[...]                               # (Fp, 1) f32
    a2 = a2_ref[...]                               # (1, Fp) f32
    # f1[i] = a1 . h_i   (column layout, broadcasts down the q axis later)
    f1 = jnp.dot(h, a1, preferred_element_type=jnp.float32)        # (tm, 1)
    # f2t[j] = a2 . h_j  built directly in row layout (NT contraction on MXU).
    f2t = jax.lax.dot_general(a2, h, (((1,), (1,)), ((), ())),
                              preferred_element_type=jnp.float32)  # (1, tm)

    h_ref[0] = h.astype(h_ref.dtype)               # bf16 writeback: half HBM traffic
    f1_ref[0] = f1
    f2t_ref[0] = f2t


# ----------------------------------------------------------------------------
# phase 2: tiled masked softmax (fixed max) + aggregation (+ ELU, concat=True)
# ----------------------------------------------------------------------------
def _gat_attn_kernel(alpha, cnt_ref, f1_ref, f2t_ref, m_ref, adj_ref, h_ref,
                     o_ref, l_sc, acc_sc):
    ki = pl.program_id(2)
    nk = pl.num_programs(2)

    @pl.when(ki == 0)
    def _init():
        l_sc[...] = jnp.zeros(l_sc.shape, l_sc.dtype)
        acc_sc[...] = jnp.zeros(acc_sc.shape, acc_sc.dtype)

    # flattened (b, qi, ki) index into the per-tile nonzero-count table (SMEM)
    flat = (pl.program_id(0) * pl.num_programs(1) + pl.program_id(1)) * nk + ki

    @pl.when(cnt_ref[flat] > 0)     # skip fully-masked kv tiles (sparse graphs)
    def _body():
        f1 = f1_ref[0]                                 # (tq, 1)  f32
        f2 = f2t_ref[0]                                # (1, tk)  f32
        m = m_ref[0]                                   # (tq, 1)  f32 fixed softmax max
        adj = adj_ref[0]                               # (tq, tk) int8 mask

        # e[i, j] = LeakyReLU(a1 . h_i + a2 . h_j)
        e = f1 + f2                                    # (tq, tk) via broadcast
        e = jnp.where(e > 0, e, alpha * e)             # LeakyReLU(alpha)
        s = jnp.where(adj > 0, e, jnp.float32(-9e15))  # mask non-edges

        # fixed max (m >= every unmasked score): no online-max recurrence and
        # no per-step rescale of l / acc.
        p = jnp.exp(s - m)                             # (tq, tk) f32, values in (0, 1]
        l_sc[...] += jnp.sum(p, axis=-1, keepdims=True)

        tk = adj.shape[-1]
        start = pl.multiple_of(ki * tk, tk)
        # batch-resident h: slice the kv tile in-kernel (no per-(qi,ki) re-DMA)
        h_kv = h_ref[0, pl.ds(start, tk), :]           # (tk, Fp) bf16
        acc_sc[...] += jnp.dot(p.astype(jnp.bfloat16), h_kv,
                               preferred_element_type=jnp.float32)

    @pl.when(ki == nk - 1)
    def _finalize():
        l = l_sc[...]
        inv_l = pl.reciprocal(jnp.maximum(l, jnp.float32(1e-30)), approx=True)
        inv_l = jnp.where(l > 0, inv_l, jnp.float32(0.0))   # isolated / pad rows -> 0
        hp = acc_sc[...] * inv_l
        # concat=True -> ELU (clamp exp arg to avoid wasted EUP work on positives)
        out = jnp.where(hp > 0, hp, jnp.exp(jnp.minimum(hp, 0.0)) - 1.0)
        o_ref[0] = out.astype(o_ref.dtype)


# ----------------------------------------------------------------------------
# wrapper
# ----------------------------------------------------------------------------
def _round_up(x, m):
    return ((x + m - 1) // m) * m


def _pick_tile(n, pref):
    """Largest tile <= pref dividing n (n < 128 -> whole axis as one tile)."""
    if n < 128:
        return n
    t = min(pref, n)
    while n % t != 0:
        t //= 2
    return t


def gat_layer(x, adj, W, a, alpha):
    """x: (B, N, Fin), adj: (B, N, N) (any dtype; nonzero => edge),
       W: (Fin, Fout), a: (2*Fout, 1).  Returns ELU(softmax(masked scores) @ (x @ W))."""
    B, N, Fin = x.shape
    Fout = W.shape[1]

    kind = jax.devices()[0].device_kind.lower()
    old_gen = any(v in kind for v in ("v2", "v3", "v4", "v5"))

    # pad N to a multiple of 128 (pad rows fully masked) and Fout to a multiple
    # of 128 (lane-dense h / output stores; pad cols stay zero).
    N_pad = N if N <= 128 else _round_up(N, 128)
    Fp = _round_up(Fout, 128)

    x = x.astype(jnp.float32)
    if N_pad != N:
        x = jnp.pad(x, ((0, 0), (0, N_pad - N), (0, 0)))
        adj = jnp.pad(adj, ((0, 0), (0, N_pad - N), (0, N_pad - N)))
    # int8 adjacency mask: 4x less HBM traffic than f32 for the dominant operand.
    if adj.dtype != jnp.int8:
        adj = (adj > 0).astype(jnp.int8)

    Wf = jnp.pad(W.astype(jnp.float32), ((0, 0), (0, Fp - Fout)))
    a1 = jnp.pad(a[:Fout, :].astype(jnp.float32), ((0, Fp - Fout), (0, 0)))    # (Fp, 1)
    a2 = jnp.pad(a[Fout:, 0].astype(jnp.float32).reshape(1, Fout),
                 ((0, 0), (0, Fp - Fout)))                                     # (1, Fp)

    # ---- phase 1: projection + attention-vector products ----
    tm = _pick_tile(N_pad, 512)   # big row tile: amortize per-step overhead / hit DMA roofline
    h, f1, f2t = pl.pallas_call(
        _project_kernel,
        out_shape=(
            jax.ShapeDtypeStruct((B, N_pad, Fp), jnp.bfloat16),   # h (bf16)
            jax.ShapeDtypeStruct((B, N_pad, 1), jnp.float32),     # f1 (column layout)
            jax.ShapeDtypeStruct((B, 1, N_pad), jnp.float32),     # f2 (row layout)
        ),
        grid_spec=pltpu.PrefetchScalarGridSpec(
            num_scalar_prefetch=0,
            grid=(B, N_pad // tm),
            in_specs=[
                pl.BlockSpec((1, tm, Fin), lambda b, i: (b, i, 0)),
                pl.BlockSpec((Fin, Fp), lambda b, i: (0, 0)),
                pl.BlockSpec((Fp, 1), lambda b, i: (0, 0)),
                pl.BlockSpec((1, Fp), lambda b, i: (0, 0)),
            ],
            out_specs=[
                pl.BlockSpec((1, tm, Fp), lambda b, i: (b, i, 0)),
                pl.BlockSpec((1, tm, 1), lambda b, i: (b, i, 0)),
                pl.BlockSpec((1, 1, tm), lambda b, i: (b, 0, i)),
            ],
        ),
        compiler_params=pltpu.CompilerParams(
            dimension_semantics=("parallel", "parallel")),
    )(x, Wf, a1, a2)

    # fixed softmax max: LeakyReLU is monotone =>
    #   every unmasked score e_ij = LeakyReLU(f1_i + f2_j) <= LeakyReLU(f1_i + max_j f2_j)
    f2max = jnp.max(f2t, axis=2, keepdims=True)            # (B, 1, 1)
    t = f1 + f2max                                         # (B, N_pad, 1)
    m = jnp.where(t > 0, t, jnp.float32(alpha) * t)        # LeakyReLU

    # ---- phase 2: tiled masked softmax + aggregation ----
    tq = _pick_tile(N_pad, 128 if old_gen else 256)  # v5e: modest q tile (f32 VPU, 1 vst)
    tk = _pick_tile(N_pad, 256)                      # fill the 256-wide MXU contraction
    nq, nk = N_pad // tq, N_pad // tk

    # per-(b, qi, ki) tile "has any edge" flags, scalar-prefetched into SMEM.
    cnt = jnp.any(adj.reshape(B, nq, tq, nk, tk) > 0,
                  axis=(2, 4)).astype(jnp.int32).reshape(-1)

    kernel = functools.partial(_gat_attn_kernel, float(alpha))

    out = pl.pallas_call(
        kernel,
        out_shape=jax.ShapeDtypeStruct((B, N_pad, Fp), jnp.float32),
        grid_spec=pltpu.PrefetchScalarGridSpec(
            num_scalar_prefetch=1,
            grid=(B, nq, nk),
            in_specs=[
                pl.BlockSpec((1, tq, 1), lambda b, qi, ki, cnt: (b, qi, 0)),    # f1
                pl.BlockSpec((1, 1, tk), lambda b, qi, ki, cnt: (b, 0, ki)),    # f2t
                pl.BlockSpec((1, tq, 1), lambda b, qi, ki, cnt: (b, qi, 0)),    # m (fixed max)
                pl.BlockSpec((1, tq, tk), lambda b, qi, ki, cnt: (b, qi, ki)),  # adj (int8)
                # h batch-resident: index constant over (qi, ki) => DMA'd once per batch,
                # kv tile sliced in-kernel (cuts h HBM traffic by nq x).
                pl.BlockSpec((1, N_pad, Fp), lambda b, qi, ki, cnt: (b, 0, 0)), # h (bf16)
            ],
            out_specs=pl.BlockSpec((1, tq, Fp), lambda b, qi, ki, cnt: (b, qi, 0)),
            scratch_shapes=[
                pltpu.VMEM((tq, 1), jnp.float32),      # l (softmax denominator)
                pltpu.VMEM((tq, Fp), jnp.float32),     # acc
            ],
        ),
        compiler_params=pltpu.CompilerParams(
            dimension_semantics=("parallel", "parallel", "arbitrary"),
            # v7x has only 64 MiB VMEM (vs 128 on v5e/v6e): keep budget under ~48 MiB.
            vmem_limit_bytes=48 * 1024 * 1024),
    )(cnt, f1, f2t, m, adj, h)

    return out[:, :N, :Fout]


# ----------------------------------------------------------------------------
# reference + test
# ----------------------------------------------------------------------------
def _xavier_uniform(key, shape, gain):
    fan_in, fan_out = shape[0], shape[1]
    bound = gain * jnp.sqrt(6.0 / (fan_in + fan_out))
    return jax.random.uniform(key, shape, jnp.float32, -bound, bound)


def _reference(x, adj, W, a, alpha):
    h = jnp.einsum("bnf,fo->bno", x, W)
    Fout = W.shape[1]
    f1 = h @ a[:Fout, 0]                      # (B, N)
    f2 = h @ a[Fout:, 0]                      # (B, N)
    e = f1[:, :, None] + f2[:, None, :]       # (B, N, N)
    e = jnp.where(e > 0, e, alpha * e)
    att = jnp.where(adj > 0, e, -9e15)
    att = jax.nn.softmax(att, axis=2)
    hp = jnp.einsum("bij,bjo->bio", att, h)
    return jnp.where(hp > 0, hp, jnp.exp(hp) - 1.0)


if __name__ == "__main__":
    alpha = 0.2
    key = jax.random.PRNGKey(0)

    configs = [
        (2, 256, 32, 128),   # tiled flash path, lane-dense output
        (2, 64, 8, 16),      # small full-block path (toy sizes), Fout padded to 128
        (1, 200, 16, 48),    # non-128-multiple N (padded to 256), padded Fout
    ]
    for (B, N, Fin, Fout) in configs:
        key, kx, kadj, kw, ka = jax.random.split(key, 5)

        x = jax.random.normal(kx, (B, N, Fin), jnp.float32)
        adj_bool = jax.random.uniform(kadj, (B, N, N)) > 0.5
        adj_bool = jnp.logical_or(adj_bool, jnp.eye(N, dtype=bool)[None])  # self loops
        adj = adj_bool.astype(jnp.int8)

        W = _xavier_uniform(kw, (Fin, Fout), gain=1.414)
        a = _xavier_uniform(ka, (2 * Fout, 1), gain=1.414)

        out = jax.block_until_ready(gat_layer(x, adj, W, a, alpha))
        ref = _reference(x, adj, W, a, alpha)

        assert out.shape == (B, N, Fout)
        # bf16 h + bf16 aggregation + approx reciprocal => looser tolerance vs f32 ref
        assert jnp.allclose(out, ref, atol=5e-2, rtol=5e-2), float(
            jnp.max(jnp.abs(out - ref)))

    print("KERNEL_OK")
</pallas_src>

<mosaic_0001>
module attributes {stable_mosaic.version = 11 : i64} {
  func.func @_project_kernel(%arg0: i32, %arg1: i32, %arg2: memref<1x256x32xf32, #tpu.memory_space<vmem>>, %arg3: memref<32x128xf32, #tpu.memory_space<vmem>>, %arg4: memref<128x1xf32, #tpu.memory_space<vmem>>, %arg5: memref<1x128xf32, #tpu.memory_space<vmem>>, %arg6: memref<1x256x128xbf16, #tpu.memory_space<vmem>>, %arg7: memref<1x256x1xf32, #tpu.memory_space<vmem>>, %arg8: memref<1x1x256xf32, #tpu.memory_space<vmem>>) attributes {dimension_semantics = [#tpu.dimension_semantics<parallel>, #tpu.dimension_semantics<parallel>], iteration_bounds = array<i64: 2, 1>, scalar_prefetch = 0 : i64, scratch_operands = 0 : i64, tpu.core_type = #tpu.core_type<tc>, window_params = [{transform_indices = @transform_0, window_bounds = array<i64: 1, 256, 32>}, {pipeline_mode = #tpu.pipeline_mode<synchronous>, transform_indices = @transform_1, window_bounds = array<i64: 32, 128>}, {pipeline_mode = #tpu.pipeline_mode<synchronous>, transform_indices = @transform_2, window_bounds = array<i64: 128, 1>}, {pipeline_mode = #tpu.pipeline_mode<synchronous>, transform_indices = @transform_3, window_bounds = array<i64: 1, 128>}, {transform_indices = @transform_4, window_bounds = array<i64: 1, 256, 128>}, {transform_indices = @transform_5, window_bounds = array<i64: 1, 256, 1>}, {transform_indices = @transform_6, window_bounds = array<i64: 1, 1, 256>}]} {
    %c0 = arith.constant 0 : index
    %c0_0 = arith.constant 0 : index
    %c0_1 = arith.constant 0 : index
    %0 = vector.load %arg2[%c0, %c0_0, %c0_1] : memref<1x256x32xf32, #tpu.memory_space<vmem>>, vector<1x256x32xf32>
    %1 = vector.shape_cast %0 : vector<1x256x32xf32> to vector<256x32xf32>
    %c0_2 = arith.constant 0 : index
    %c0_3 = arith.constant 0 : index
    %2 = vector.load %arg3[%c0_2, %c0_3] : memref<32x128xf32, #tpu.memory_space<vmem>>, vector<32x128xf32>
    %cst = arith.constant dense<0.000000e+00> : vector<256x128xf32>
    %3 = tpu.matmul %1, %2, %cst {dimension_numbers = #tpu.dot_dimension_numbers<[1], [0], [0], [1], [0, 0, 1, 1], [], []>} : vector<256x32xf32>, vector<32x128xf32>, vector<256x128xf32> -> vector<256x128xf32>
    %c0_4 = arith.constant 0 : index
    %c0_5 = arith.constant 0 : index
    %4 = vector.load %arg4[%c0_4, %c0_5] : memref<128x1xf32, #tpu.memory_space<vmem>>, vector<128x1xf32>
    %c0_6 = arith.constant 0 : index
    %c0_7 = arith.constant 0 : index
    %5 = vector.load %arg5[%c0_6, %c0_7] : memref<1x128xf32, #tpu.memory_space<vmem>>, vector<1x128xf32>
    %cst_8 = arith.constant dense<0.000000e+00> : vector<256x1xf32>
    %6 = tpu.matmul %3, %4, %cst_8 {dimension_numbers = #tpu.dot_dimension_numbers<[1], [0], [0], [1], [0, 0, 1, 1], [], []>} : vector<256x128xf32>, vector<128x1xf32>, vector<256x1xf32> -> vector<256x1xf32>
    %cst_9 = arith.constant dense<0.000000e+00> : vector<1x256xf32>
    %7 = tpu.matmul %5, %3, %cst_9 {dimension_numbers = #tpu.dot_dimension_numbers<[1], [1], [0], [0], [0, 0, 1, 0], [], []>} : vector<1x128xf32>, vector<256x128xf32>, vector<1x256xf32> -> vector<1x256xf32>
    %8 = arith.truncf %3 : vector<256x128xf32> to vector<256x128xbf16>
    %c0_10 = arith.constant 0 : index
    %c0_11 = arith.constant 0 : index
    %c0_12 = arith.constant 0 : index
    %9 = vector.load %arg6[%c0_10, %c0_11, %c0_12] : memref<1x256x128xbf16, #tpu.memory_space<vmem>>, vector<1x256x128xbf16>
    %10 = vector.shape_cast %9 : vector<1x256x128xbf16> to vector<256x128xbf16>
    %11 = vector.shape_cast %8 : vector<256x128xbf16> to vector<1x256x128xbf16>
    tpu.vector_store %arg6[%c0_10, %c0_11, %c0_12], %11 {strides = array<i32>} : memref<1x256x128xbf16, #tpu.memory_space<vmem>>, vector<1x256x128xbf16>,
    %c0_13 = arith.constant 0 : index
    %c0_14 = arith.constant 0 : index
    %c0_15 = arith.constant 0 : index
    %12 = vector.load %arg7[%c0_13, %c0_14, %c0_15] : memref<1x256x1xf32, #tpu.memory_space<vmem>>, vector<1x256x1xf32>
    %13 = vector.shape_cast %12 : vector<1x256x1xf32> to vector<256x1xf32>
    %14 = vector.shape_cast %6 : vector<256x1xf32> to vector<1x256x1xf32>
    tpu.vector_store %arg7[%c0_13, %c0_14, %c0_15], %14 {strides = array<i32>} : memref<1x256x1xf32, #tpu.memory_space<vmem>>, vector<1x256x1xf32>,
    %c0_16 = arith.constant 0 : index
    %c0_17 = arith.constant 0 : index
    %c0_18 = arith.constant 0 : index
    %15 = vector.load %arg8[%c0_16, %c0_17, %c0_18] : memref<1x1x256xf32, #tpu.memory_space<vmem>>, vector<1x1x256xf32>
    %16 = vector.shape_cast %15 : vector<1x1x256xf32> to vector<1x256xf32>
    %17 = vector.shape_cast %7 : vector<1x256xf32> to vector<1x1x256xf32>
    tpu.vector_store %arg8[%c0_16, %c0_17, %c0_18], %17 {strides = array<i32>} : memref<1x1x256xf32, #tpu.memory_space<vmem>>, vector<1x1x256xf32>,
    return
  }
  func.func @transform_0(%arg0: i32, %arg1: i32) -> (i32, i32, i32) {
    %c0_i32 = arith.constant 0 : i32
    %c0_i32_0 = arith.constant 0 : i32
    return %arg0, %arg1, %c0_i32 : i32, i32, i32
  }
  func.func @transform_1(%arg0: i32, %arg1: i32) -> (i32, i32) {
    %c0_i32 = arith.constant 0 : i32
    %c0_i32_0 = arith.constant 0 : i32
    %c0_i32_1 = arith.constant 0 : i32
    return %c0_i32, %c0_i32_0 : i32, i32
  }
  func.func @transform_2(%arg0: i32, %arg1: i32) -> (i32, i32) {
    %c0_i32 = arith.constant 0 : i32
    %c0_i32_0 = arith.constant 0 : i32
    %c0_i32_1 = arith.constant 0 : i32
    return %c0_i32, %c0_i32_0 : i32, i32
  }
  func.func @transform_3(%arg0: i32, %arg1: i32) -> (i32, i32) {
    %c0_i32 = arith.constant 0 : i32
    %c0_i32_0 = arith.constant 0 : i32
    %c0_i32_1 = arith.constant 0 : i32
    return %c0_i32, %c0_i32_0 : i32, i32
  }
  func.func @transform_4(%arg0: i32, %arg1: i32) -> (i32, i32, i32) {
    %c0_i32 = arith.constant 0 : i32
    %c0_i32_0 = arith.constant 0 : i32
    return %arg0, %arg1, %c0_i32 : i32, i32, i32
  }
  func.func @transform_5(%arg0: i32, %arg1: i32) -> (i32, i32, i32) {
    %c0_i32 = arith.constant 0 : i32
    %c0_i32_0 = arith.constant 0 : i32
    return %arg0, %arg1, %c0_i32 : i32, i32, i32
  }
  func.func @transform_6(%arg0: i32, %arg1: i32) -> (i32, i32, i32) {
    %c0_i32 = arith.constant 0 : i32
    %c0_i32_0 = arith.constant 0 : i32
    return %arg0, %c0_i32, %arg1 : i32, i32, i32
  }
}

</mosaic_0001>

<bundles_post_ra>
// kernel: tpu_custom_call.1
= control target key start
LH: loop header
LB: loop body
LE: loop exit
PB: predicated region body
PF: predicated region fallthrough
CT: control target
= control target key end

     0   :  { %12 = vsyncpa [#allocation3], 0  ;;  %s2562_s0 = inlined_call_operand.vmem [shape: f32[2,256,32], index: 0, kind: input, shape index: {}]   ;;  %s2563_s1 = inlined_call_operand.vmem [shape: f32[32,128], index: 1, kind: input, shape index: {}]   ;;  %s2564_s2 = inlined_call_operand.vmem [shape: f32[128,1], index: 2, kind: input, shape index: {}]   ;;  %s2565_s3 = inlined_call_operand.vmem [shape: f32[1,128], index: 3, kind: input, shape index: {}]   ;;  %s2566_s4 = inlined_call_operand.hbm [shape: bf16[2,256,128], index: 4, kind: output, shape index: {0}]   ;;  %s2567_s5 = inlined_call_operand.vmem [shape: f32[2,256,1], index: 5, kind: output, shape index: {1}]   ;;  %s2568_s6 = inlined_call_operand.hbm [shape: f32[2,1,256], index: 6, kind: output, shape index: {2}]  }
   0x1   :  { %14 = vsyncpa [#allocation3 + $0x1], 0 }
   0x2   :  { %15 = vsyncpa [#allocation5], 0 }
   0x3   :  { %17 = vsyncpa [#allocation5 + $0x1], 0  ;;  %s2161_s21 = smov 0   ;;  %s2163_s22 = smov 0  }
   0x4   :  { %s2165_s23 = smov 0   ;;  %s2167_s24 = smov 0  }
   0x5   :  { %s2169_s25 = smov 0   ;;  %s2171_s26 = smov 0  }
   0x6 LB: > { %s1406_s27 = sadd.s32 4294967295, %s2119_s26   ;;  %s1407_s28 = sadd.s32 4294967294, %s2119_s26   ;;  %s2119_s26 = sphi %s2171_s26, %s23_s26   ;;  %s2115_s25 = sphi %s2169_s25, %s2575_s25   ;;  %s2111_s24 = sphi %s2167_s24, %s2574_s24   ;;  %s2107_s23 = sphi %s2165_s23, %s2573_s23   ;;  %s2103_s22 = sphi %s2163_s22, %s2572_s22   ;;  %s2099_s21 = sphi %s2161_s21, %s2571_s21  }
   0x7   : > { %s35_s29 = sadd.s32 1, %s2115_s25  ;;  %s135_s30 = sadd.s32 1, %s2107_s23 }
   0x8   : > { %p37_p0 = scmp.ge.s32.totalorder %s35_s29, 2  ;;  %p145_p1 = scmp.ne.s32.totalorder %s2107_s23, %s2103_s22 }
   0x9   : > { %p146_p2 = scmp.eq.s32.totalorder %s1406_s27, 1  ;;  %p151_p3 = scmp.ne.s32.totalorder %s2103_s22, %s2099_s21 }
   0xa   : > { %s2577_s29 = smov (%p37_p0, %s35_s29), 0  ;;  %p152_p5 = scmp.eq.s32.totalorder %s1407_s28, 1 }
   0xb   : > { %p2201_p4 = por %p146_p2, %p145_p1  ;;  %s130_s8 = ssub.s32 %s2115_s25, %s2577_s29 }
   0xc   : > { %p1410_p6 = scmp.ge.s32.totalorder %s2119_s26, 1  ;;  %p133_p7 = scmp.eq.s32.totalorder %s130_s8, 0 }
   0xd   : > { %p2208_p8 = por %p152_p5, %p151_p3  ;;  %p248_p9 = scmp.lt.s32.totalorder %s2119_s26, 3 }
   0xe   : > { %s2214_s10 = scalar_select %p133_p7, %s2107_s23, %s135_s30  }
   0xf   : > { %p249_p10 = pnand %p1410_p6, %p248_p9 }
  0x10   : > { %v350_v0 = vld [vmem:[%s2563_s1] sm:$0xff] (!%p249_p10)  ;;  %v351_v1 = vld [vmem:[%s2563_s1 + $0x8] sm:$0xff] (!%p249_p10)  ;;  %v352_v2 = vld [vmem:[%s2563_s1 + $0x10] sm:$0xff] (!%p249_p10)  ;;  %p297_p11 = scmp.lt.s32.totalorder (!%p249_p10), %s2111_s24, 1  ;;  %vm354_vm0 = vcmask (!%p249_p10), 261120   ;;  %s2359_s28 = sand.u32 (!%p249_p10), 1, %s2103_s22  }
  0x11   : > { %252 = sbr.rel (%p249_p10) target bundleno = 574 (0x23e), region = 36  ;;  %v1874_v3 = vpack.c.bf16 (!%p249_p10), %v351_v1, %v350_v0  ;;  %v353_v4 = vld [vmem:[%s2563_s1 + $0x18] sm:$0xff] (!%p249_p10)  ;;  %v676_v5 = vld [vmem:[%s2564_s2] sm:$0xff] (!%p249_p10)  ;;  %v677_v6 = vld [vmem:[%s2564_s2 + $0x8] sm:$0xff] (!%p249_p10)  ;;  %s1411_s8 = sshll.u32 (!%p249_p10), %s2359_s28, 7 }
  0x12   : > { %v1878_v7 = vpack.c.bf16 (!%p249_p10), %v353_v4, %v352_v2  ;;  %v1882_v8 = vpack.c.bf16 (!%p249_p10), %v677_v6, %v676_v5  ;;  %v678_v9 = vld [vmem:[%s2564_s2 + $0x10] sm:$0xff] (!%p249_p10)  ;;  %v679_v10 = vld [vmem:[%s2564_s2 + $0x18] sm:$0xff] (!%p249_p10)  ;;  %v680_v12 = vld [vmem:[%s2564_s2 + $0x20] sm:$0xff] (!%p249_p10)  ;;  %s2362_s11 = scalar_lea.vmem (!%p249_p10), [#allocation2], %s1411_s8  ;;  %s1206_s16 = scalar_lea.sflag (!%p249_p10), [#allocation3], %s2359_s28 }
  0x13   : > { %1875 = vmatprep.subr.bf16.mxu0 (!%p249_p10), %v1874_v3  ;;  %v1886_v11 = vpack.c.bf16 (!%p249_p10), %v679_v10, %v678_v9  ;;  %v681_v13 = vld [vmem:[%s2564_s2 + $0x28] sm:$0xff] (!%p249_p10)  ;;  %v682_v16 = vld [vmem:[%s2564_s2 + $0x30] sm:$0xff] (!%p249_p10)  ;;  %v683_v17 = vld [vmem:[%s2564_s2 + $0x38] sm:$0xff] (!%p249_p10)  ;;  %s1235_s12 = sshll.u32 (!%p249_p10), %s2362_s11, 4  ;;  %s2121_s19 = smov (!%p249_p10), [#allocation2]   ;;  %s2412_s12 = int_to_ptr.vmem [resolvable:$true] %s1235_s12 }
  0x14   : > { %1877 = vmatpush3.bf16.msra.mxu0 (!%p249_p10), %v1874_v3  ;;  %1883 = vmatprep.subr.bf16.mxu1 (!%p249_p10), %v1882_v8  ;;  %v1890_v15 = vpack.c.bf16 (!%p249_p10), %v681_v13, %v680_v12  ;;  %v1894_v20 = vpack.c.bf16 (!%p249_p10), %v683_v17, %v682_v16  ;;  %v684_v21 = vld [vmem:[%s2564_s2 + $0x40] sm:$0xff] (!%p249_p10)  ;;  %v685_v22 = vld [vmem:[%s2564_s2 + $0x48] sm:$0xff] (!%p249_p10)  ;;  %v686_v26 = vld [vmem:[%s2564_s2 + $0x50] sm:$0xff] (!%p249_p10)  ;;  %s2009_s17 = scalar_lea.vmem (!%p249_p10), %s2412_s12, 2048  ;;  %s2013_s20 = sshll.u32 (!%p249_p10), %s2121_s19, 4  ;;  %s2014_s20 = int_to_ptr.vmem [resolvable:$false] %s2013_s20 }
  0x15   : > { %1879 = vmatprep.subr.bf16.mxu0 (!%p249_p10), %v1878_v7  ;;  %1885 = vmatpush3.bf16.msra.mxu1 (!%p249_p10), %v1882_v8  ;;  %v1898_v25 = vpack.c.bf16 (!%p249_p10), %v685_v22, %v684_v21  ;;  %v687_v27 = vld [vmem:[%s2564_s2 + $0x58] sm:$0xff] (!%p249_p10)  ;;  %v688_v31 = vld [vmem:[%s2564_s2 + $0x60] sm:$0xff] (!%p249_p10)  ;;  %v689_v32 = vld [vmem:[%s2564_s2 + $0x68] sm:$0xff] (!%p249_p10)  ;;  %p2010_p12 = scmp.ne.s32.totalorder (!%p249_p10), %s2412_s12, %s2009_s17  ;;  %s2015_s8 = scalar_lea.vmem (!%p249_p10), %s2014_s20, 4096 }
  0x16   : > { %1887 = vmatprep.subr.bf16.mxu1 (!%p249_p10), %v1886_v11  ;;  %v1902_v30 = vpack.c.bf16 (!%p249_p10), %v687_v27, %v686_v26  ;;  %v1906_v35 = vpack.c.bf16 (!%p249_p10), %v689_v32, %v688_v31  ;;  %v690_v36 = vld [vmem:[%s2564_s2 + $0x70] sm:$0xff] (!%p249_p10)  ;;  %v691_v37 = vld [vmem:[%s2564_s2 + $0x78] sm:$0xff] (!%p249_p10)  ;;  %v2355_v62 = vld [vmem:[%s2565_s3] sm:$0x1] (!%p249_p10)  ;;  %p2016_p1 = scmp.lt.s32.totalorder (!%p249_p10), %s2412_s12, %s2014_s20  ;;  %p2017_p2 = scmp.lt.s32.totalorder (!%p249_p10), %s2015_s8, %s2009_s17 }
  0x17   : > { %v1910_v40 = vpack.c.bf16 (!%p249_p10), %v691_v37, %v690_v36  ;;  %p2011_p13 = pnand (!%p249_p10), %p2010_p12, %p2201_p4 }
  0x18   : > { %s2236_s30 = scalar_select %p297_p11, %s2111_s24, 1  ;;  %1881 = vmatpush3.bf16.msra.mxu0 %v1878_v7 }
  0x19   : > { %1889 = vmatpush3.bf16.msra.mxu1 %v1886_v11  ;;  %p2012_p0 = pneg %p2011_p13  ;;  %p2018_p3 = por %p2017_p2, %p2016_p1 }
  0x1a   : > { %s1489_s18 = sshll.u32 %s2236_s30, 8  ;;  %1891 = vmatprep.subr.bf16.mxu1 %v1890_v15 }
  0x1b   : > { %s2256_s27 = scalar_lea.vmem %s2562_s0, %s1489_s18  ;;  %p2019_p5 = pnand %p2018_p3, %p2012_p0 }
  0x1c   : > { %v318_v14 = vld [vmem:[%s2256_s27] sm:$0xff]  ;;  %v319_v18 = vld [vmem:[%s2256_s27 + $0x8] sm:$0xff]  ;;  %v320_v19 = vld [vmem:[%s2256_s27 + $0x10] sm:$0xff] }
  0x1d   : > { %1746 = vmatprep.mubr.msk.f32.mxu0 %vm354_vm0, %v318_v14  ;;  %v321_v23 = vld [vmem:[%s2256_s27 + $0x18] sm:$0xff]  ;;  %v322_v24 = vld [vmem:[%s2256_s27 + $0x20] sm:$0xff]  ;;  %1893 = vmatpush3.bf16.msra.mxu1 %v1890_v15  ;;  %v323_v28 = vld [vmem:[%s2256_s27 + $0x28] sm:$0xff] }
  0x1e   : > { %1747 = vmatmul.mubr.msk.f32.vlgmr.msra.gmra.mrb[0].mxu0 %vm354_vm0, %v319_v18  ;;  %1895 = vmatprep.subr.bf16.mxu1 %v1894_v20  ;;  %v324_v29 = vld [vmem:[%s2256_s27 + $0x30] sm:$0xff]  ;;  %v325_v33 = vld [vmem:[%s2256_s27 + $0x38] sm:$0xff]  ;;  %v326_v34 = vld [vmem:[%s2256_s27 + $0x40] sm:$0xff] }
  0x1f   : > { %1749 = vmatprep.mubr.msk.f32.mxu0 %vm354_vm0, %v320_v19  ;;  %v327_v38 = vld [vmem:[%s2256_s27 + $0x48] sm:$0xff]  ;;  %v328_v39 = vld [vmem:[%s2256_s27 + $0x50] sm:$0xff]  ;;  %v329_v41 = vld [vmem:[%s2256_s27 + $0x58] sm:$0xff] }
  0x20   : > { %v330_v42 = vld [vmem:[%s2256_s27 + $0x60] sm:$0xff]  ;;  %v331_v43 = vld [vmem:[%s2256_s27 + $0x68] sm:$0xff]  ;;  %v332_v44 = vld [vmem:[%s2256_s27 + $0x70] sm:$0xff] }
  0x21   : > { %1897 = vmatpush3.bf16.msra.mxu1 %v1894_v20  ;;  %v333_v45 = vld [vmem:[%s2256_s27 + $0x78] sm:$0xff]  ;;  %v334_v46 = vld [vmem:[%s2256_s27 + $0x80] sm:$0xff]  ;;  %v335_v47 = vld [vmem:[%s2256_s27 + $0x88] sm:$0xff] }
  0x22   : > { %1750 = vmatmul.mubr.msk.f32.gmra.mrb[2].mxu0 %vm354_vm0, %v321_v23  ;;  %1899 = vmatprep.subr.bf16.mxu1 %v1898_v25  ;;  %v336_v48 = vld [vmem:[%s2256_s27 + $0x90] sm:$0xff]  ;;  %v337_v49 = vld [vmem:[%s2256_s27 + $0x98] sm:$0xff]  ;;  %v338_v50 = vld [vmem:[%s2256_s27 + $0xa0] sm:$0xff] }
  0x23   : > { %1752 = vmatprep.mubr.msk.f32.mxu0 %vm354_vm0, %v322_v24  ;;  %v339_v51 = vld [vmem:[%s2256_s27 + $0xa8] sm:$0xff]  ;;  %v340_v52 = vld [vmem:[%s2256_s27 + $0xb0] sm:$0xff]  ;;  %v341_v53 = vld [vmem:[%s2256_s27 + $0xb8] sm:$0xff] }
  0x24   : > { %v342_v54 = vld [vmem:[%s2256_s27 + $0xc0] sm:$0xff]  ;;  %v343_v55 = vld [vmem:[%s2256_s27 + $0xc8] sm:$0xff]  ;;  %v344_v56 = vld [vmem:[%s2256_s27 + $0xd0] sm:$0xff] }
  0x25   : > { %1901 = vmatpush3.bf16.msra.mxu1 %v1898_v25  ;;  %v345_v57 = vld [vmem:[%s2256_s27 + $0xd8] sm:$0xff]  ;;  %v346_v58 = vld [vmem:[%s2256_s27 + $0xe0] sm:$0xff]  ;;  %v347_v59 = vld [vmem:[%s2256_s27 + $0xe8] sm:$0xff] }
  0x26   : > { %1753 = vmatmul.mubr.msk.f32.gmra.mrb[4].mxu0 %vm354_vm0, %v323_v28  ;;  %1903 = vmatprep.subr.bf16.mxu1 %v1902_v30  ;;  %v348_v60 = vld [vmem:[%s2256_s27 + $0xf0] sm:$0xff]  ;;  %v349_v61 = vld [vmem:[%s2256_s27 + $0xf8] sm:$0xff]  ;;  %s1523_s27 = sshll.u32 %s2111_s24, 11 }
  0x27   : > { %1755 = vmatprep.mubr.msk.f32.mxu0 %vm354_vm0, %v324_v29  ;;  %s2410_s15 = scalar_lea.hbm %s2566_s4, %s1523_s27 }
  0x29   : > { %1905 = vmatpush3.bf16.msra.mxu1 %v1902_v30 }
  0x2a   : > { %1756 = vmatmul.mubr.msk.f32.gmra.mrb[6].mxu0 %vm354_vm0, %v325_v33  ;;  %1907 = vmatprep.subr.bf16.mxu1 %v1906_v35 }
  0x2b   : > { %1758 = vmatprep.mubr.msk.f32.mxu0 %vm354_vm0, %v326_v34 }
  0x2d   : > { %1909 = vmatpush3.bf16.msra.mxu1 %v1906_v35 }
  0x2e   : > { %1759 = vmatmul.mubr.msk.f32.gmra.mrb[8].mxu0 %vm354_vm0, %v327_v38  ;;  %1911 = vmatprep.subr.bf16.mxu1 %v1910_v40 }
  0x2f   : > { %1761 = vmatprep.mubr.msk.f32.mxu0 %vm354_vm0, %v328_v39 }
  0x31   : > { %1913 = vmatpush3.bf16.msra.mxu1 %v1910_v40 }
  0x32   : > { %1762 = vmatmul.mubr.msk.f32.gmra.mrb[10].mxu0 %vm354_vm0, %v329_v41 }
  0x33   : > { %1764 = vmatprep.mubr.msk.f32.mxu0 %vm354_vm0, %v330_v42 }
  0x36   : > { %1765 = vmatmul.mubr.msk.f32.gmra.mrb[12].mxu0 %vm354_vm0, %v331_v43 }
  0x37   : > { %1767 = vmatprep.mubr.msk.f32.mxu0 %vm354_vm0, %v332_v44 }
  0x3a   : > { %1768 = vmatmul.mubr.msk.f32.gmra.mrb[14].mxu0 %vm354_vm0, %v333_v45 }
  0x3b   : > { %1770 = vmatprep.mubr.msk.f32.mxu0 %vm354_vm0, %v334_v46 }
  0x3e   : > { %1771 = vmatmul.mubr.msk.f32.gmra.mrb[16].mxu0 %vm354_vm0, %v335_v47 }
  0x3f   : > { %1773 = vmatprep.mubr.msk.f32.mxu0 %vm354_vm0, %v336_v48 }
  0x42   : > { %1774 = vmatmul.mubr.msk.f32.gmra.mrb[18].mxu0 %vm354_vm0, %v337_v49 }
  0x43   : > { %1776 = vmatprep.mubr.msk.f32.mxu0 %vm354_vm0, %v338_v50 }
  0x46   : > { %1777 = vmatmul.mubr.msk.f32.gmra.mrb[20].mxu0 %vm354_vm0, %v339_v51 }
  0x47   : > { %1779 = vmatprep.mubr.msk.f32.mxu0 %vm354_vm0, %v340_v52 }
  0x4a   : > { %1780 = vmatmul.mubr.msk.f32.gmra.mrb[22].mxu0 %vm354_vm0, %v341_v53 }
  0x4b   : > { %1782 = vmatprep.mubr.msk.f32.mxu0 %vm354_vm0, %v342_v54 }
  0x4e   : > { %1783 = vmatmul.mubr.msk.f32.gmra.mrb[24].mxu0 %vm354_vm0, %v343_v55 }
  0x4f   : > { %1785 = vmatprep.mubr.msk.f32.mxu0 %vm354_vm0, %v344_v56 }
  0x52   : > { %1786 = vmatmul.mubr.msk.f32.gmra.mrb[26].mxu0 %vm354_vm0, %v345_v57 }
  0x53   : > { %1788 = vmatprep.mubr.msk.f32.mxu0 %vm354_vm0, %v346_v58 }
  0x56   : > { %1789 = vmatmul.mubr.msk.f32.gmra.mrb[28].mxu0 %vm354_vm0, %v347_v59 }
  0x57   : > { %1791 = vmatprep.mubr.msk.f32.mxu0 %vm354_vm0, %v348_v60 }
  0x5a   : > { %1792 = vmatmul.mubr.msk.f32.gmra.mrb[30].mxu0 %vm354_vm0, %v349_v61 }
  0x5b   : > { %1736 = vmatprep.mubr.f32.mxu0 %v2355_v62 }
  0xf1   : > { %v1748_v63 = vpop.f32.mrb[0].mxu0 }
  0xf2   : > { %v517_v0 = vpop.f32.mrb[1].mxu0 }
  0xf3   : > { %v1916_v1 = vpack.c.bf16 %v1748_v63, %v517_v0  ;;  %1826 = vmatprep.mubr.f32.mxu1 %v517_v0 }
  0xf4   : > { %1827 = vmatmul.mubr.f32.vlgmr.msra.gmra.mrb[0].mxu1 %v1748_v63 }
  0xf5   : > { %1529 = vst [vmem:[%s2362_s11] sm:$0xff] %v1916_v1   ;;  %v1751_v2 = vpop.f32.mrb[2].mxu0 }
  0xf6   : > { %v527_v3 = vpop.f32.mrb[3].mxu0 }
  0xf7   : > { %v1920_v4 = vpack.c.bf16 %v1751_v2, %v527_v3  ;;  %1829 = vmatprep.mubr.f32.mxu1 %v527_v3 }
  0xf8   : > { %1830 = vmatmul.mubr.f32.gmra.mrb[2].mxu1 %v1751_v2 }
  0xf9   : > { %1605 = vst [vmem:[%s2362_s11 + $0x8] sm:$0xff] %v1920_v4   ;;  %v1754_v5 = vpop.f32.mrb[4].mxu0 }
  0xfa   : > { %v537_v6 = vpop.f32.mrb[5].mxu0 }
  0xfb   : > { %v2366_v7 = vpack.c.bf16 %v1754_v5, %v537_v6  ;;  %1832 = vmatprep.mubr.f32.mxu1 %v537_v6 }
  0xfc   : > { %1833 = vmatmul.mubr.f32.gmra.mrb[4].mxu1 %v1754_v5 }
  0xfd   : > { %1606 = vst [vmem:[%s2362_s11 + $0x10] sm:$0xff] %v2366_v7   ;;  %v1757_v8 = vpop.f32.mrb[6].mxu0 }
  0xfe   : > { %v547_v9 = vpop.f32.mrb[7].mxu0 }
  0xff   : > { %v2370_v10 = vpack.c.bf16 %v1757_v8, %v547_v9  ;;  %1835 = vmatprep.mubr.f32.mxu1 %v547_v9 }
 0x100   : > { %1836 = vmatmul.mubr.f32.gmra.mrb[6].mxu1 %v1757_v8 }
 0x101   : > { %1607 = vst [vmem:[%s2362_s11 + $0x18] sm:$0xff] %v2370_v10   ;;  %v1760_v11 = vpop.f32.mrb[8].mxu0 }
 0x102   : > { %v557_v12 = vpop.f32.mrb[9].mxu0 }
 0x103   : > { %v2374_v13 = vpack.c.bf16 %v1760_v11, %v557_v12  ;;  %1838 = vmatprep.mubr.f32.mxu1 %v557_v12 }
 0x104   : > { %1839 = vmatmul.mubr.f32.gmra.mrb[8].mxu1 %v1760_v11 }
 0x105   : > { %1608 = vst [vmem:[%s2362_s11 + $0x20] sm:$0xff] %v2374_v13   ;;  %v1763_v14 = vpop.f32.mrb[10].mxu0 }
 0x106   : > { %v567_v15 = vpop.f32.mrb[11].mxu0 }
 0x107   : > { %v2378_v16 = vpack.c.bf16 %v1763_v14, %v567_v15  ;;  %1841 = vmatprep.mubr.f32.mxu1 %v567_v15 }
 0x108   : > { %1842 = vmatmul.mubr.f32.gmra.mrb[10].mxu1 %v1763_v14 }
 0x109   : > { %1609 = vst [vmem:[%s2362_s11 + $0x28] sm:$0xff] %v2378_v16   ;;  %v1766_v17 = vpop.f32.mrb[12].mxu0 }
 0x10a   : > { %v577_v18 = vpop.f32.mrb[13].mxu0 }
 0x10b   : > { %v2382_v19 = vpack.c.bf16 %v1766_v17, %v577_v18  ;;  %1844 = vmatprep.mubr.f32.mxu1 %v577_v18 }
 0x10c   : > { %1845 = vmatmul.mubr.f32.gmra.mrb[12].mxu1 %v1766_v17 }
 0x10d   : > { %1610 = vst [vmem:[%s2362_s11 + $0x30] sm:$0xff] %v2382_v19   ;;  %v1769_v20 = vpop.f32.mrb[14].mxu0 }
 0x10e   : > { %v587_v21 = vpop.f32.mrb[15].mxu0 }
 0x10f   : > { %v2386_v22 = vpack.c.bf16 %v1769_v20, %v587_v21  ;;  %1847 = vmatprep.mubr.f32.mxu1 %v587_v21 }
 0x110   : > { %1848 = vmatmul.mubr.f32.gmra.mrb[14].mxu1 %v1769_v20 }
 0x111   : > { %1611 = vst [vmem:[%s2362_s11 + $0x38] sm:$0xff] %v2386_v22   ;;  %v1772_v23 = vpop.f32.mrb[16].mxu0 }
 0x112   : > { %v597_v24 = vpop.f32.mrb[17].mxu0 }
 0x113   : > { %v1914_v25 = vpack.c.bf16 %v1772_v23, %v597_v24  ;;  %1850 = vmatprep.mubr.f32.mxu1 %v597_v24 }
 0x114   : > { %1851 = vmatmul.mubr.f32.gmra.mrb[16].mxu1 %v1772_v23 }
 0x115   : > { %1612 = vst [vmem:[%s2362_s11 + $0x40] sm:$0xff] %v1914_v25   ;;  %1915 = vmatprep.subr.bf16.mxu0 %v1914_v25  ;;  %v1775_v26 = vpop.f32.mrb[18].mxu0 }
 0x116   : > { %1917 = vmatpush3.bf16.xpose.msra.mxu0 %v1916_v1  ;;  %v607_v27 = vpop.f32.mrb[19].mxu0 }
 0x117   : > { %v1918_v28 = vpack.c.bf16 %v1775_v26, %v607_v27  ;;  %1853 = vmatprep.mubr.f32.mxu1 %v607_v27 }
 0x118   : > { %1854 = vmatmul.mubr.f32.gmra.mrb[18].mxu1 %v1775_v26 }
 0x119   : > { %1613 = vst [vmem:[%s2362_s11 + $0x48] sm:$0xff] %v1918_v28   ;;  %1919 = vmatprep.subr.bf16.mxu0 %v1918_v28  ;;  %v1778_v29 = vpop.f32.mrb[20].mxu0 }
 0x11a   : > { %v617_v30 = vpop.f32.mrb[21].mxu0 }
 0x11b   : > { %v1922_v31 = vpack.c.bf16 %v1778_v29, %v617_v30  ;;  %1856 = vmatprep.mubr.f32.mxu1 %v617_v30 }
 0x11c   : > { %1857 = vmatmul.mubr.f32.gmra.mrb[20].mxu1 %v1778_v29 }
 0x11d   : > { %1614 = vst [vmem:[%s2362_s11 + $0x50] sm:$0xff] %v1922_v31   ;;  %v1781_v32 = vpop.f32.mrb[22].mxu0 }
 0x11e   : > { %1921 = vmatpush3.bf16.xpose.msra.mxu0 %v1920_v4  ;;  %v627_v33 = vpop.f32.mrb[23].mxu0 }
 0x11f   : > { %1923 = vmatprep.subr.bf16.mxu0 %v1922_v31  ;;  %v1926_v34 = vpack.c.bf16 %v1781_v32, %v627_v33  ;;  %1859 = vmatprep.mubr.f32.mxu1 %v627_v33 }
 0x120   : > { %1860 = vmatmul.mubr.f32.gmra.mrb[22].mxu1 %v1781_v32 }
 0x121   : > { %1615 = vst [vmem:[%s2362_s11 + $0x58] sm:$0xff] %v1926_v34   ;;  %v1784_v35 = vpop.f32.mrb[24].mxu0 }
 0x122   : > { %v637_v36 = vpop.f32.mrb[25].mxu0 }
 0x123   : > { %v1930_v37 = vpack.c.bf16 %v1784_v35, %v637_v36  ;;  %1862 = vmatprep.mubr.f32.mxu1 %v637_v36 }
 0x124   : > { %1863 = vmatmul.mubr.f32.gmra.mrb[24].mxu1 %v1784_v35 }
 0x125   : > { %1616 = vst [vmem:[%s2362_s11 + $0x60] sm:$0xff] %v1930_v37   ;;  %v1787_v38 = vpop.f32.mrb[26].mxu0 }
 0x126   : > { %1925 = vmatpush3.bf16.xpose.msra.mxu0 %v2366_v7  ;;  %v647_v39 = vpop.f32.mrb[27].mxu0 }
 0x127   : > { %1927 = vmatprep.subr.bf16.mxu0 %v1926_v34  ;;  %v1934_v40 = vpack.c.bf16 %v1787_v38, %v647_v39  ;;  %1865 = vmatprep.mubr.f32.mxu1 %v647_v39 }
 0x128   : > { %1866 = vmatmul.mubr.f32.gmra.mrb[26].mxu1 %v1787_v38 }
 0x129   : > { %1617 = vst [vmem:[%s2362_s11 + $0x68] sm:$0xff] %v1934_v40   ;;  %v1790_v41 = vpop.f32.mrb[28].mxu0 }
 0x12a   : > { %v657_v42 = vpop.f32.mrb[29].mxu0 }
 0x12b   : > { %v1938_v43 = vpack.c.bf16 %v1790_v41, %v657_v42  ;;  %1868 = vmatprep.mubr.f32.mxu1 %v657_v42 }
 0x12c   : > { %1869 = vmatmul.mubr.f32.gmra.mrb[28].mxu1 %v1790_v41 }
 0x12d   : > { %1618 = vst [vmem:[%s2362_s11 + $0x70] sm:$0xff] %v1938_v43   ;;  %v1793_v44 = vpop.f32.mrb[30].mxu0 }
 0x12e   : > { %1929 = vmatpush3.bf16.xpose.msra.mxu0 %v2370_v10  ;;  %v667_v45 = vpop.f32.mrb[31].mxu0 }
 0x12f   : > { %1931 = vmatprep.subr.bf16.mxu0 %v1930_v37  ;;  %v1942_v46 = vpack.c.bf16 %v1793_v44, %v667_v45  ;;  %1871 = vmatprep.mubr.f32.mxu1 %v667_v45 }
 0x130   : > { %1872 = vmatmul.mubr.f32.gmra.mrb[30].mxu1 %v1793_v44 }
 0x131   : > { %1619 = vst [vmem:[%s2362_s11 + $0x78] sm:$0xff] %v1942_v46  }
 0x136   : > { %1933 = vmatpush3.bf16.xpose.msra.mxu0 %v2374_v13 }
 0x137   : > { %1935 = vmatprep.subr.bf16.mxu0 %v1934_v40 }
 0x13e   : > { %1937 = vmatpush3.bf16.xpose.msra.mxu0 %v2378_v16 }
 0x13f   : > { %1939 = vmatprep.subr.bf16.mxu0 %v1938_v43 }
 0x146   : > { %1941 = vmatpush3.bf16.xpose.msra.mxu0 %v2382_v19 }
 0x147   : > { %1943 = vmatprep.subr.bf16.mxu0 %v1942_v46 }
 0x14e   : > { %1945 = vmatpush3.bf16.xpose.msra.mxu0 %v2386_v22 }
 0x155   : > { %1737 = vmatmul.mubr.f32.vlgmr.msra.gmra.mrb[32].mxu0 %v2355_v62 }
 0x156   : > { %2022 = shalt.err (!%p2019_p5)
}
 0x157   : > { %s2023_s11 = scalar_lea.hbm %s2410_s15, 2048  ;;  %s2027_s14 = scalar_lea.hbm %s2566_s4, 4096 }
 0x158   : > { %p2024_p6 = scmp.ne.s32.totalorder %s2410_s15, %s2023_s11  ;;  %p2028_p10 = scmp.lt.u32.totalorder %s2410_s15, %s2566_s4 }
 0x159   : > { %p2029_p11 = scmp.lt.u32.totalorder %s2027_s14, %s2023_s11  ;;  %p2031_p13 = scmp.lt.u32.totalorder %s2023_s11, %s2410_s15 }
 0x15a   : > { %p2025_p7 = pnand %p2024_p6, %p2201_p4 }
 0x15b   : > { %p2030_p12 = por %p2029_p11, %p2028_p10 }
 0x15c   : > { %p2026_p9 = pneg %p2025_p7 }
 0x15d   : > { %p2032_p0 = por %p2031_p13, %p2030_p12 }
 0x15f   : > { %p2033_p1 = pnand %p2032_p0, %p2026_p9 }
 0x161   : > { %2036 = shalt.err (!%p2033_p1)
}
 0x162   : > { %s2122_s17 = smov 64   ;;  %s2123_s8 = smov 4   ;;  %vm1149_vm1 = vcmask 7168   ;;  %v2124_v15 = vmov 1966171168   ;;  %v1188_v17 = vlaneseq }
 0x163   : > { %1946 = dma.vmem_to_hbm [thread:$0]  (%p2201_p4), %s2412_s12, 2048, %s2410_s15, %s1206_s16, %s2122_s17, %s2122_s17, %s2123_s8   ;;  %v1186_v16 = vunpack.c.l.s4 %v2124_v15 }
 0x164   : > { %s2443_s14 = scalar_lea.vmem %s2567_s5, %s1489_s18  ;;  %v1189_v19 = vshrl.u32 %v1188_v17, 7  ;;  %s1412_s30 = sshll.u32 %s2359_s28, 1  ;;  %vm1202_vm2 = vcmp.lt.s32.totalorder %v1188_v17, 256 }
 0x165   : > { %v1187_v18 = vunpack.c.0.s8 %v1186_v16  ;;  %s1524_s18 = sshll.u32 %s2111_s24, 5  ;;  %s295_s12 = scalar_lea.vmem [#allocation4], %s1412_s30 }
 0x166   : > { %s1258_s15 = sshll.u32 %s295_s12, 4  ;;  %s2514_s19 = scalar_lea.hbm %s2568_s6, %s1524_s18  ;;  %s2516_s15 = int_to_ptr.vmem [resolvable:$true] %s1258_s15 }
 0x167   : > { %v1190_v21 = vsub.s32 %v1187_v18, %v1189_v19  ;;  %s1220_s20 = scalar_lea.sflag [#allocation5], %s2359_s28  ;;  %s2037_s17 = scalar_lea.vmem %s2516_s15, 32 }
 0x168   : > { %p2038_p2 = scmp.ne.s32.totalorder %s2516_s15, %s2037_s17  ;;  %s2125_s24 = smov [#allocation4]  }
 0x169   : > { %s2041_s8 = sshll.u32 %s2125_s24, 4  ;;  %s2042_s8 = int_to_ptr.vmem [resolvable:$false] %s2041_s8 }
 0x16a   : > { %p2039_p3 = pnand %p2038_p2, %p2201_p4  ;;  %s2043_s27 = scalar_lea.vmem %s2042_s8, 64 }
 0x16b   : > { %p2044_p6 = scmp.lt.s32.totalorder %s2516_s15, %s2042_s8  ;;  %p2045_p7 = scmp.lt.s32.totalorder %s2043_s27, %s2037_s17 }
 0x16c   : > { %p2040_p5 = pneg %p2039_p3 }
 0x16d   : > { %p2046_p9 = por %p2045_p7, %p2044_p6 }
 0x16f   : > { %p2047_p10 = pnand %p2046_p9, %p2040_p5 }
 0x1c7   : > { %v1828_v47 = vpop.f32.mrb[0].mxu1 }
 0x1c8   : > { %1151 = vst.msk [vmem:[%s2443_s14 + $0x8] sm:$0xff] %vm1149_vm1, %v1828_v47  ;;  %v759_v48 = vpop.f32.mrb[1].mxu1 }
 0x1c9   : > { %1150 = vst.msk [vmem:[%s2443_s14] sm:$0xff] %vm1149_vm1, %v759_v48 }
 0x1cb   : > { %v1831_v49 = vpop.f32.mrb[2].mxu1 }
 0x1cc   : > { %1153 = vst.msk [vmem:[%s2443_s14 + $0x18] sm:$0xff] %vm1149_vm1, %v1831_v49  ;;  %v769_v50 = vpop.f32.mrb[3].mxu1 }
 0x1cd   : > { %1152 = vst.msk [vmem:[%s2443_s14 + $0x10] sm:$0xff] %vm1149_vm1, %v769_v50 }
 0x1cf   : > { %v1834_v51 = vpop.f32.mrb[4].mxu1 }
 0x1d0   : > { %1155 = vst.msk [vmem:[%s2443_s14 + $0x28] sm:$0xff] %vm1149_vm1, %v1834_v51  ;;  %v779_v52 = vpop.f32.mrb[5].mxu1 }
 0x1d1   : > { %1154 = vst.msk [vmem:[%s2443_s14 + $0x20] sm:$0xff] %vm1149_vm1, %v779_v52 }
 0x1d3   : > { %v1837_v53 = vpop.f32.mrb[6].mxu1 }
 0x1d4   : > { %1157 = vst.msk [vmem:[%s2443_s14 + $0x38] sm:$0xff] %vm1149_vm1, %v1837_v53  ;;  %v789_v54 = vpop.f32.mrb[7].mxu1 }
 0x1d5   : > { %1156 = vst.msk [vmem:[%s2443_s14 + $0x30] sm:$0xff] %vm1149_vm1, %v789_v54 }
 0x1d7   : > { %v1840_v55 = vpop.f32.mrb[8].mxu1 }
 0x1d8   : > { %1159 = vst.msk [vmem:[%s2443_s14 + $0x48] sm:$0xff] %vm1149_vm1, %v1840_v55  ;;  %v799_v56 = vpop.f32.mrb[9].mxu1 }
 0x1d9   : > { %1158 = vst.msk [vmem:[%s2443_s14 + $0x40] sm:$0xff] %vm1149_vm1, %v799_v56 }
 0x1db   : > { %v1843_v57 = vpop.f32.mrb[10].mxu1 }
 0x1dc   : > { %1161 = vst.msk [vmem:[%s2443_s14 + $0x58] sm:$0xff] %vm1149_vm1, %v1843_v57  ;;  %v809_v58 = vpop.f32.mrb[11].mxu1 }
 0x1dd   : > { %1160 = vst.msk [vmem:[%s2443_s14 + $0x50] sm:$0xff] %vm1149_vm1, %v809_v58 }
 0x1df   : > { %v1846_v59 = vpop.f32.mrb[12].mxu1 }
 0x1e0   : > { %1163 = vst.msk [vmem:[%s2443_s14 + $0x68] sm:$0xff] %vm1149_vm1, %v1846_v59  ;;  %v819_v60 = vpop.f32.mrb[13].mxu1 }
 0x1e1   : > { %1162 = vst.msk [vmem:[%s2443_s14 + $0x60] sm:$0xff] %vm1149_vm1, %v819_v60 }
 0x1e3   : > { %v1849_v61 = vpop.f32.mrb[14].mxu1 }
 0x1e4   : > { %1165 = vst.msk [vmem:[%s2443_s14 + $0x78] sm:$0xff] %vm1149_vm1, %v1849_v61  ;;  %v829_v62 = vpop.f32.mrb[15].mxu1 }
 0x1e5   : > { %1164 = vst.msk [vmem:[%s2443_s14 + $0x70] sm:$0xff] %vm1149_vm1, %v829_v62 }
 0x1e7   : > { %v1852_v63 = vpop.f32.mrb[16].mxu1 }
 0x1e8   : > { %1167 = vst.msk [vmem:[%s2443_s14 + $0x88] sm:$0xff] %vm1149_vm1, %v1852_v63  ;;  %v839_v0 = vpop.f32.mrb[17].mxu1 }
 0x1e9   : > { %1166 = vst.msk [vmem:[%s2443_s14 + $0x80] sm:$0xff] %vm1149_vm1, %v839_v0 }
 0x1eb   : > { %v1855_v1 = vpop.f32.mrb[18].mxu1 }
 0x1ec   : > { %1169 = vst.msk [vmem:[%s2443_s14 + $0x98] sm:$0xff] %vm1149_vm1, %v1855_v1  ;;  %v849_v2 = vpop.f32.mrb[19].mxu1 }
 0x1ed   : > { %1168 = vst.msk [vmem:[%s2443_s14 + $0x90] sm:$0xff] %vm1149_vm1, %v849_v2 }
 0x1ef   : > { %v1858_v3 = vpop.f32.mrb[20].mxu1 }
 0x1f0   : > { %1171 = vst.msk [vmem:[%s2443_s14 + $0xa8] sm:$0xff] %vm1149_vm1, %v1858_v3  ;;  %v859_v4 = vpop.f32.mrb[21].mxu1 }
 0x1f1   : > { %1170 = vst.msk [vmem:[%s2443_s14 + $0xa0] sm:$0xff] %vm1149_vm1, %v859_v4 }
 0x1f3   : > { %v1861_v5 = vpop.f32.mrb[22].mxu1 }
 0x1f4   : > { %1173 = vst.msk [vmem:[%s2443_s14 + $0xb8] sm:$0xff] %vm1149_vm1, %v1861_v5  ;;  %v869_v6 = vpop.f32.mrb[23].mxu1 }
 0x1f5   : > { %1172 = vst.msk [vmem:[%s2443_s14 + $0xb0] sm:$0xff] %vm1149_vm1, %v869_v6 }
 0x1f7   : > { %v1864_v7 = vpop.f32.mrb[24].mxu1 }
 0x1f8   : > { %1175 = vst.msk [vmem:[%s2443_s14 + $0xc8] sm:$0xff] %vm1149_vm1, %v1864_v7  ;;  %v879_v8 = vpop.f32.mrb[25].mxu1 }
 0x1f9   : > { %1174 = vst.msk [vmem:[%s2443_s14 + $0xc0] sm:$0xff] %vm1149_vm1, %v879_v8 }
 0x1fb   : > { %v1867_v9 = vpop.f32.mrb[26].mxu1 }
 0x1fc   : > { %1177 = vst.msk [vmem:[%s2443_s14 + $0xd8] sm:$0xff] %vm1149_vm1, %v1867_v9  ;;  %v889_v10 = vpop.f32.mrb[27].mxu1 }
 0x1fd   : > { %1176 = vst.msk [vmem:[%s2443_s14 + $0xd0] sm:$0xff] %vm1149_vm1, %v889_v10 }
 0x1ff   : > { %v1870_v11 = vpop.f32.mrb[28].mxu1 }
 0x200   : > { %1179 = vst.msk [vmem:[%s2443_s14 + $0xe8] sm:$0xff] %vm1149_vm1, %v1870_v11  ;;  %v899_v12 = vpop.f32.mrb[29].mxu1 }
 0x201   : > { %1178 = vst.msk [vmem:[%s2443_s14 + $0xe0] sm:$0xff] %vm1149_vm1, %v899_v12 }
 0x203   : > { %v1873_v13 = vpop.f32.mrb[30].mxu1 }
 0x204   : > { %1181 = vst.msk [vmem:[%s2443_s14 + $0xf8] sm:$0xff] %vm1149_vm1, %v1873_v13  ;;  %v909_v14 = vpop.f32.mrb[31].mxu1 }
 0x205   : > { %1180 = vst.msk [vmem:[%s2443_s14 + $0xf0] sm:$0xff] %vm1149_vm1, %v909_v14 }
 0x228   : > { %v984_v20 = vpop.f32.mrb[32].mxu0 }
 0x229   : > { %v986_v22 = vpop.f32.mrb[33].mxu0 }
 0x22a   : > { %v1184_v23 = vcombine.low %v984_v20, %v986_v22 }
 0x22c   : > { %v1191_v24 = vrot.slane %v1184_v23, %v1190_v21 }
 0x22e   : > { %v1198_v25 = vrot.slane %v1191_v24, %v1190_v21 }
 0x230   : > { %1204 = vst.msk [vmem:[%s295_s12] sm:$0x3] %vm1202_vm2, %v1198_v25 }
 0x231   : > { %2050 = shalt.err (!%p2047_p10)
}
 0x232   : > { %s2051_s28 = scalar_lea.hbm %s2514_s19, 32  ;;  %s2055_s30 = scalar_lea.hbm %s2568_s6, 64 }
 0x233   : > { %p2052_p11 = scmp.ne.s32.totalorder %s2514_s19, %s2051_s28  ;;  %p2056_p0 = scmp.lt.u32.totalorder %s2514_s19, %s2568_s6 }
 0x234   : > { %p2057_p1 = scmp.lt.u32.totalorder %s2055_s30, %s2051_s28  ;;  %p2059_p3 = scmp.lt.u32.totalorder %s2051_s28, %s2514_s19 }
 0x235   : > { %p2053_p12 = pnand %p2052_p11, %p2201_p4 }
 0x236   : > { %p2058_p2 = por %p2057_p1, %p2056_p0 }
 0x237   : > { %p2054_p13 = pneg %p2053_p12 }
 0x238   : > { %p2060_p5 = por %p2059_p3, %p2058_p2 }
 0x23a   : > { %p2061_p6 = pnand %p2060_p5, %p2054_p13 }
 0x23c   : > { %2064 = shalt.err (!%p2061_p6)
}
 0x23d   : > { %1947 = dma.vmem_to_hbm [thread:$0]  (%p2201_p4), %s2516_s15, 32, %s2514_s19, %s1220_s20  }
 0x23e PF: > { %p1957_p7 = scmp.ge.s32.totalorder %s2119_s26, 2  ;;  %s1270_s16 = sand.u32 1, %s2099_s21  }
 0x23f   : > { %s1271_s11 = scalar_lea.sflag [#allocation3], %s1270_s16 }
 0x240   : > { %p1951_p9 = pnand %p1957_p7, %p2208_p8 }
 0x242   : > { %2090 = dma.done.wait (!%p1951_p9), %s1271_s11, 2048  }
 0x243   : > { %2092 = vsyncadd (!%p1951_p9), %s1271_s11, 4294965248  ;;  %s1292_s17 = scalar_lea.sflag [#allocation5], %s1270_s16 }
 0x244   : > { %2094 = dma.done.wait (!%p1951_p9), %s1292_s17, 32  }
 0x245   : > { %2096 = vsyncadd (!%p1951_p9), %s1292_s17, 4294967264  ;;  %s23_s26 = sadd.s32 1, %s2119_s26   ;;  %s2571_s21 = smov %s2103_s22 }
 0x246   : > { %p20_p10 = scmp.ge.s32.totalorder %s23_s26, 4   ;;  %s2572_s22 = smov %s2107_s23 }
 0x247   : > { %s2573_s23 = smov %s2214_s10  ;;  %s2574_s24 = smov %s2115_s25 }
 0x248   : > { %s2575_s25 = smov %s2577_s29  ;;  %22 = sbr.rel (!%p20_p10) target bundleno = 6 (0x6), region = 100 }
 0x24f   :  { %1297 = vsyncpa [#allocation3], 1 }
 0x250   :  { %1299 = vsyncpa [#allocation3 + $0x1], 1 }
 0x251   :  { %1300 = vsyncpa [#allocation5], 1 }
 0x252   :  { %1302 = vsyncpa [#allocation5 + $0x1], 1 }

</bundles_post_ra>
